<compile_context>
chip_gen: v6e
topology: v6e:2x2x1
jax: 0.10.0
libtpu: 0.0.40
codegen_flags: <defaults>
</compile_context>

<pallas_src>
import functools

import numpy as np
import jax
import jax.numpy as jnp
from jax.experimental import pallas as pl
from jax.experimental.pallas import tpu as pltpu


def _efficient_attention_kernel(x_ref, wc_ref, o_ref, acc_ref, *,
                                tiles_per_split, inv_l):
    """Grid = (split s, L-tile li).  x_ref is a (l_tile, N, C) slab, acc_ref (N, C) f32."""
    li = pl.program_id(1)

    @pl.when(li == 0)
    def _init():
        acc_ref[...] = jnp.zeros_like(acc_ref)

    # Streaming partial sum over L (pure VALU adds; the kernel is HBM-bound).
    acc_ref[...] += jnp.sum(x_ref[...].astype(jnp.float32), axis=0)          # (N, C)

    @pl.when(li == tiles_per_split - 1)
    def _finalize():
        # Per-split partial of: mean_l(x) @ (Wo Wv)^T   (bias added once in the wrapper).
        vg = (acc_ref[...] * inv_l).astype(wc_ref.dtype)                      # (N, C) bf16
        z = jnp.dot(vg, wc_ref[...], preferred_element_type=jnp.float32)      # (N, C) f32
        o_ref[...] = z[None, :, :].astype(o_ref.dtype)                        # (1, N, C)


def _pick_l_tile(L, N, C, *, vmem_budget=24 << 20):
    """Largest l_tile whose double-buffered (l_tile, N, C) f32 slab fits the budget."""
    n_pad = -(-N // 8) * 8
    c_pad = -(-C // 128) * 128
    w_bytes = 2 * (-(-C // 16) * 16) * c_pad * 2        # folded bf16 weight, 2 buffers
    acc_bytes = n_pad * c_pad * 4                       # resident accumulator
    out_bytes = 2 * n_pad * c_pad * 4                   # (1, N, C) out blocks, 2 buffers
    x_budget = max(vmem_budget - w_bytes - acc_bytes - out_bytes, 2 << 20)
    row_bytes = n_pad * c_pad * 4
    max_rows = max(x_budget // (2 * row_bytes), 8)      # 2 = double buffering of x
    l_tile = int(min(L, max_rows))
    if l_tile >= 8:
        l_tile -= l_tile % 8
    return max(l_tile, 1)


def efficient_attention(x, wq, wk, wv, wo, bo, num_heads, *, l_tile=None):
    """x: (L, N, C); wq/wk/wv/wo in torch layout (out, in) = (C, C); bo: (C,).

    wq / wk / num_heads only feed the softmax-over-a-size-1-axis branch, which is
    identically 1.0, so they are accepted for signature parity but unused.
    """
    del wq, wk, num_heads  # provably-dead attention branch (softmax over size-1 axis == 1)

    L, N, C = x.shape

    # Fold the two linear maps (linear maps commute with the mean):
    #   row = xbar @ Wv^T @ Wo^T + bo = xbar @ (Wo @ Wv)^T + bo
    wc = (wo @ wv).T.astype(jnp.bfloat16)                       # (C, C), used as row @ wc

    lt = int(l_tile) if l_tile is not None else _pick_l_tile(L, N, C)
    lt = max(1, min(lt, L))
    total_tiles = pl.cdiv(L, lt)
    n_splits = 2 if total_tiles >= 2 else 1                     # feeds both v7x TCs
    tiles_per_split = pl.cdiv(total_tiles, n_splits)

    # Zero-pad the ragged tail once (zeros don't change the sum; mean uses true 1/L).
    l_pad = n_splits * tiles_per_split * lt
    xp = x if l_pad == L else jnp.pad(x, ((0, l_pad - L), (0, 0), (0, 0)))

    kernel = functools.partial(_efficient_attention_kernel,
                               tiles_per_split=tiles_per_split, inv_l=1.0 / L)

    grid_spec = pltpu.PrefetchScalarGridSpec(
        num_scalar_prefetch=0,
        grid=(n_splits, tiles_per_split),
        in_specs=[
            # Contiguous (l_tile, N, C) slab in x's native layout.
            pl.BlockSpec((lt, N, C), lambda s, li: (s * tiles_per_split + li, 0, 0)),
            # Folded weight, untiled / VMEM-resident (constant index map).
            pl.BlockSpec((C, C), lambda s, li: (0, 0)),
        ],
        # One (1, N, C) partial result per split, resident across the L-reduction axis.
        out_specs=pl.BlockSpec((1, N, C), lambda s, li: (s, 0, 0)),
        scratch_shapes=[pltpu.VMEM((N, C), jnp.float32)],       # per-split x-sum accumulator
    )

    cost = pl.CostEstimate(
        flops=2 * n_splits * N * C * C + l_pad * N * C,
        transcendentals=0,
        bytes_accessed=int(l_pad * N * C * x.dtype.itemsize + C * C * 2
                           + n_splits * N * C * 4),
    )

    z = pl.pallas_call(
        kernel,
        out_shape=jax.ShapeDtypeStruct((n_splits, N, C), jnp.float32),
        grid_spec=grid_spec,
        compiler_params=pltpu.CompilerParams(
            dimension_semantics=("parallel", "arbitrary"),
            vmem_limit_bytes=32 * 1024 * 1024,
        ),
        cost_estimate=cost,
    )(xp, wc)

    # Combine the split partials, add the bias once, broadcast over L in the wrapper
    # (no (L, C) block ever lives in VMEM; kernel HBM writes are only n_splits*N*C).
    row = z.sum(axis=0) + bo[None, :]                            # (N, C) f32
    return jnp.broadcast_to(row[None, :, :], (L, N, C)).astype(x.dtype)


def efficient_attention_reference(x, wq, wk, wv, wo, bo, num_heads):
    """Pure-JAX mirror of the PyTorch forward (for validation)."""
    L, N, C = x.shape
    H = num_heads
    D = C // H
    scale = D ** (-0.5)
    q = (x @ wq.T).reshape(L, N, H, D).transpose(1, 2, 0, 3)     # (N,H,L,D)
    k = (x @ wk.T).reshape(L, N, H, D).transpose(1, 2, 0, 3)
    v = (x @ wv.T).reshape(L, N, H, D).transpose(1, 2, 0, 3)
    k_global = k.mean(axis=2, keepdims=True)                     # (N,H,1,D)
    v_global = v.mean(axis=2)                                    # (N,H,D)
    attn = jnp.einsum("nhld,nhmd->nhlm", q, k_global) * scale    # (N,H,L,1)
    attn = jax.nn.softmax(attn, axis=-1)
    out = jnp.einsum("nhlm,nhmd->nhld", attn, v_global[:, :, None, :])
    out = out.transpose(2, 0, 1, 3).reshape(L, N, C)
    return out @ wo.T + bo


if __name__ == "__main__":
    # seq, batch, dim, heads (head_dim = 8).  L=20 is deliberately ragged.
    L, N, C, H = 20, 2, 32, 4

    key = jax.random.PRNGKey(0)
    kx, kq, kk, kv, ko, kb = jax.random.split(key, 6)
    x = jax.random.normal(kx, (L, N, C), dtype=jnp.float32)
    wq = jax.random.normal(kq, (C, C), dtype=jnp.float32) * 0.05
    wk = jax.random.normal(kk, (C, C), dtype=jnp.float32) * 0.05
    wv = jax.random.normal(kv, (C, C), dtype=jnp.float32) * 0.05
    wo = jax.random.normal(ko, (C, C), dtype=jnp.float32) * 0.05
    bo = jax.random.normal(kb, (C,), dtype=jnp.float32) * 0.05

    # l_tile=8 -> 3 real tiles -> 2 splits x 2 tiles: exercises the multi-step resident
    # accumulator reduction, the zero-padded tail and the cross-core split combine.
    y = efficient_attention(x, wq, wk, wv, wo, bo, num_heads=H, l_tile=8)
    y = jax.block_until_ready(y)

    y_ref = efficient_attention_reference(x, wq, wk, wv, wo, bo, num_heads=H)
    # bf16 folded weight on the MXU -> slightly looser tolerance than pure-f32.
    np.testing.assert_allclose(np.asarray(y), np.asarray(y_ref), atol=1e-2, rtol=1e-2)

    print("KERNEL_OK")
</pallas_src>

<mosaic_0001>
module attributes {stable_mosaic.version = 11 : i64} {
  func.func @_efficient_attention_kernel(%arg0: i32, %arg1: i32, %arg2: memref<8x2x32xf32, #tpu.memory_space<vmem>>, %arg3: memref<32x32xbf16, #tpu.memory_space<vmem>>, %arg4: memref<1x2x32xf32, #tpu.memory_space<vmem>>, %arg5: memref<2x32xf32, #tpu.memory_space<vmem>>) attributes {dimension_semantics = [#tpu.dimension_semantics<parallel>, #tpu.dimension_semantics<arbitrary>], iteration_bounds = array<i64: 2, 2>, scalar_prefetch = 0 : i64, scratch_operands = 1 : i64, tpu.core_type = #tpu.core_type<tc>, window_params = [{transform_indices = @transform_0, window_bounds = array<i64: 8, 2, 32>}, {pipeline_mode = #tpu.pipeline_mode<synchronous>, transform_indices = @transform_1, window_bounds = array<i64: 32, 32>}, {transform_indices = @transform_2, window_bounds = array<i64: 1, 2, 32>}]} {
    %c0_i32 = arith.constant 0 : i32
    %0 = arith.cmpi eq, %arg1, %c0_i32 : i32
    %1 = arith.extui %0 : i1 to i32
    %c0_i32_0 = arith.constant 0 : i32
    %2 = arith.cmpi ne, %1, %c0_i32_0 : i32
    scf.if %2 {
      %cst_8 = arith.constant 0.000000e+00 : f32
      %11 = vector.broadcast %cst_8 : f32 to vector<2x32xf32>
      %c0_9 = arith.constant 0 : index
      %c0_10 = arith.constant 0 : index
      %12 = vector.load %arg5[%c0_9, %c0_10] : memref<2x32xf32, #tpu.memory_space<vmem>>, vector<2x32xf32>
      tpu.vector_store %arg5[%c0_9, %c0_10], %11 {strides = array<i32>} : memref<2x32xf32, #tpu.memory_space<vmem>>, vector<2x32xf32>,
    } else {
    }
    %c0 = arith.constant 0 : index
    %c0_1 = arith.constant 0 : index
    %3 = vector.load %arg5[%c0, %c0_1] : memref<2x32xf32, #tpu.memory_space<vmem>>, vector<2x32xf32>
    %c0_2 = arith.constant 0 : index
    %c0_3 = arith.constant 0 : index
    %c0_4 = arith.constant 0 : index
    %4 = vector.load %arg2[%c0_2, %c0_3, %c0_4] : memref<8x2x32xf32, #tpu.memory_space<vmem>>, vector<8x2x32xf32>
    %cst = arith.constant dense<0.000000e+00> : vector<2x32xf32>
    %5 = vector.multi_reduction <add>, %4, %cst [0] : vector<8x2x32xf32> to vector<2x32xf32>
    %6 = arith.addf %3, %5 : vector<2x32xf32>
    %c0_5 = arith.constant 0 : index
    %c0_6 = arith.constant 0 : index
    %7 = vector.load %arg5[%c0_5, %c0_6] : memref<2x32xf32, #tpu.memory_space<vmem>>, vector<2x32xf32>
    tpu.vector_store %arg5[%c0_5, %c0_6], %6 {strides = array<i32>} : memref<2x32xf32, #tpu.memory_space<vmem>>, vector<2x32xf32>,
    %c1_i32 = arith.constant 1 : i32
    %8 = arith.cmpi eq, %arg1, %c1_i32 : i32
    %9 = arith.extui %8 : i1 to i32
    %c0_i32_7 = arith.constant 0 : i32
    %10 = arith.cmpi ne, %9, %c0_i32_7 : i32
    scf.if %10 {
      %c0_8 = arith.constant 0 : index
      %c0_9 = arith.constant 0 : index
      %11 = vector.load %arg5[%c0_8, %c0_9] : memref<2x32xf32, #tpu.memory_space<vmem>>, vector<2x32xf32>
      %cst_10 = arith.constant 5.000000e-02 : f32
      %12 = vector.broadcast %cst_10 : f32 to vector<2x32xf32>
      %13 = arith.mulf %11, %12 : vector<2x32xf32>
      %14 = arith.truncf %13 : vector<2x32xf32> to vector<2x32xbf16>
      %c0_11 = arith.constant 0 : index
      %c0_12 = arith.constant 0 : index
      %15 = vector.load %arg3[%c0_11, %c0_12] : memref<32x32xbf16, #tpu.memory_space<vmem>>, vector<32x32xbf16>
      %cst_13 = arith.constant dense<0.000000e+00> : vector<2x32xf32>
      %16 = tpu.matmul %14, %15, %cst_13 {dimension_numbers = #tpu.dot_dimension_numbers<[1], [0], [0], [1], [0, 0, 1, 1], [], []>} : vector<2x32xbf16>, vector<32x32xbf16>, vector<2x32xf32> -> vector<2x32xf32>
      %17 = vector.shape_cast %16 : vector<2x32xf32> to vector<1x2x32xf32>
      %c0_14 = arith.constant 0 : index
      %c0_15 = arith.constant 0 : index
      %c0_16 = arith.constant 0 : index
      %18 = vector.load %arg4[%c0_14, %c0_15, %c0_16] : memref<1x2x32xf32, #tpu.memory_space<vmem>>, vector<1x2x32xf32>
      tpu.vector_store %arg4[%c0_14, %c0_15, %c0_16], %17 {strides = array<i32>} : memref<1x2x32xf32, #tpu.memory_space<vmem>>, vector<1x2x32xf32>,
    } else {
    }
    return
  }
  func.func @transform_0(%arg0: i32, %arg1: i32) -> (i32, i32, i32) {
    %c2_i32 = arith.constant 2 : i32
    %0 = arith.muli %arg0, %c2_i32 : i32
    %1 = arith.addi %0, %arg1 : i32
    %c0_i32 = arith.constant 0 : i32
    %c0_i32_0 = arith.constant 0 : i32
    %c0_i32_1 = arith.constant 0 : i32
    return %1, %c0_i32, %c0_i32_0 : i32, i32, i32
  }
  func.func @transform_1(%arg0: i32, %arg1: i32) -> (i32, i32) {
    %c0_i32 = arith.constant 0 : i32
    %c0_i32_0 = arith.constant 0 : i32
    %c0_i32_1 = arith.constant 0 : i32
    return %c0_i32, %c0_i32_0 : i32, i32
  }
  func.func @transform_2(%arg0: i32, %arg1: i32) -> (i32, i32, i32) {
    %c0_i32 = arith.constant 0 : i32
    %c0_i32_0 = arith.constant 0 : i32
    %c0_i32_1 = arith.constant 0 : i32
    return %arg0, %c0_i32, %c0_i32_0 : i32, i32, i32
  }
}

</mosaic_0001>

<bundles_post_ra>
// kernel: tpu_custom_call.1
= control target key start
LH: loop header
LB: loop body
LE: loop exit
PB: predicated region body
PF: predicated region fallthrough
CT: control target
= control target key end

     0   :  { %s1006_s0 = inlined_call_operand.hbm [shape: f32[32,2,32], index: 0, kind: input, shape index: {}]   ;;  %s1007_s1 = inlined_call_operand.hbm [shape: bf16[32,32], index: 1, kind: input, shape index: {}]   ;;  %s1008_s2 = inlined_call_operand.hbm [shape: f32[2,2,32], index: 2, kind: output, shape index: {}]  }
   0x1   :  { %1016 = sst [smem:[#allocation17_spill]] %s1007_s1 }
   0x2   :  { %1017 = sst [smem:[#allocation18_spill]] %s1008_s2 }
   0x3   :  { %7 = vsyncpa [#allocation4], 0 }
   0x4   :  { %9 = vsyncpa [#allocation4 + $0x1], 0 }
   0x5   :  { %10 = vsyncpa [#allocation7], 0 }
   0x6   :  { %11 = vsyncpa [#allocation5], 0 }
   0x7   :  { %13 = vsyncpa [#allocation5 + $0x1], 0  ;;  %s770_s9 = smov 0   ;;  %s772_s10 = smov 0  }
   0x8   :  { %s774_s11 = smov 0   ;;  %s776_s12 = smov 0  }
   0x9   :  { %s778_s13 = smov 0   ;;  %s780_s14 = smov 0  }
   0xa   :  { %s782_s15 = smov 0   ;;  %s784_s16 = smov 0  }
   0xb   :  { %s786_s17 = smov 0   ;;  %s788_s18 = smov 0  }
   0xc   :  { %s790_s19 = smov 0  }
   0xd LB: > { %1018 = sst [smem:[#allocation12_spill]] %s703_s9  ;;  %s407_s20 = sadd.s32 4294967295, %s743_s19   ;;  %s743_s19 = sphi %s790_s19, %s19_s19   ;;  %s739_s18 = sphi %s788_s18, %s1047_s18   ;;  %s735_s17 = sphi %s786_s17, %s1046_s17   ;;  %s731_s16 = sphi %s784_s16, %s1045_s16   ;;  %s727_s15 = sphi %s782_s15, %s1038_s15   ;;  %s723_s14 = sphi %s780_s14, %s1044_s14   ;;  %s719_s13 = sphi %s778_s13, %s1043_s13   ;;  %s715_s12 = sphi %s776_s12, %s1042_s12   ;;  %s711_s11 = sphi %s774_s11, %s1041_s11   ;;  %s707_s10 = sphi %s772_s10, %s1040_s10   ;;  %s703_s9 = sphi %s770_s9, %s1039_s9  }
   0xe   : > { %1019 = sst [smem:[#allocation13_spill]] %s731_s16  ;;  %s408_s21 = sadd.s32 4294967294, %s743_s19  }
   0xf   : > { %1020 = sst [smem:[#allocation14_spill]] %s735_s17  ;;  %p55_p0 = scmp.ne.s32.totalorder %s719_s13, %s715_s12 }
  0x10   : > { %p826_p1 = scmp.eq.s32.totalorder %s407_s20, 0  ;;  %s89_s23 = sadd.s32 1, %s711_s11 }
  0x11   : > { %p99_p2 = scmp.ne.s32.totalorder %s711_s11, %s707_s10  ;;  %p100_p4 = scmp.eq.s32.totalorder %s407_s20, 3 }
  0x12   : > { %p835_p3 = por %p826_p1, %p55_p0  ;;  %p105_p5 = scmp.ne.s32.totalorder %s707_s10, %s703_s9 }
  0x13   : > { %p106_p6 = scmp.eq.s32.totalorder %s408_s21, 3  ;;  %p841_p7 = por %p100_p4, %p99_p2 }
  0x14   : > { %p411_p8 = scmp.ge.s32.totalorder %s743_s19, 1  ;;  %p113_p10 = scmp.lt.s32.totalorder %s743_s19, 5 }
  0x15   : > { %s1023_s25 = scalar_select %p841_p7, 1, 0 }
  0x16   : > { %p846_p9 = por %p106_p6, %p105_p5  ;;  %p851_p11 = pnand %p411_p8, %p113_p10 }
  0x17   : > { %1024 = sst [smem:[#allocation15_spill]] %s1023_s25  ;;  %s745_s28 = smov [#allocation6]  }
  0x18   : > { %s1025_s26 = scalar_select %p846_p9, 1, 0 }
  0x19   : > { %s125_s29 = sshll.u32 %s745_s28, 4  ;;  %p451_p12 = pneg %p851_p11  ;;  %s126_s29 = int_to_ptr.vmem [resolvable:$true] %s125_s29 }
  0x1a   : > { %1026 = sst [smem:[#allocation16_spill]] %s1025_s26  ;;  %s576_s30 = scalar_lea.vmem %s126_s29, 256 }
  0x1b   : > { %p452_p13 = pnand %p451_p12, %p826_p1  ;;  %p577_p2 = scmp.ne.s32.totalorder %s126_s29, %s576_s30 }
  0x1c   : > { %p584_p6 = scmp.lt.s32.totalorder %s126_s29, %s126_s29  ;;  %p585_p9 = scmp.lt.s32.totalorder %s576_s30, %s576_s30 }
  0x1d   : > { %p567_p0 = pneg %p452_p13 }
  0x1e   : > { %p586_p7 = por %p585_p9, %p584_p6 }
  0x1f   : > { %p579_p4 = pnand %p577_p2, %p567_p0 }
  0x21   : > { %p580_p5 = pneg %p579_p4 }
  0x23   : > { %p587_p8 = pnand %p586_p7, %p580_p5 }
  0x25   : > { %590 = shalt.err (!%p587_p8)
}
  0x26   : > { %s746_s3 = smov 64   ;;  %s747_s4 = smov 4  }
  0x27   : > { %s1028_s1 = sld [smem:[#allocation17_spill]]  ;;  %s28_s7 = sadd.s32 1, %s735_s17 }
  0x28   : > { %p29_p7 = scmp.ge.s32.totalorder %s28_s7, 2  ;;  %s31_s8 = sadd.s32 1, %s739_s18 }
  0x29   : > { %s409_s12 = sshll.u32 %s739_s18, 1  ;;  %s42_s20 = sadd.s32 1, %s723_s14 }
  0x2a   : > { %s1049_s7 = smov (%p29_p7, %s28_s7), 0  ;;  %s1051_s8 = smov (!%p29_p7, %s31_s8), %s739_s18 }
  0x2b   : > { %s36_s21 = sadd.s32 %s735_s17, %s409_s12  ;;  %p49_p9 = scmp.ne.s32.totalorder %s723_s14, %s719_s13 }
  0x2c   : > { %p33_p10 = scmp.ge.s32.totalorder %s1051_s8, 2  ;;  %p50_p12 = scmp.eq.s32.totalorder %s743_s19, 0 }
  0x2d   : > { %454 = dma.hbm_to_vmem [thread:$0]  (!%p452_p13), %s1028_s1, 256, %s126_s29, [#allocation7], %s746_s3, %s746_s3, %s747_s4  }
  0x2e   : > { %p464_p0 = scmp.lt.s32.totalorder %s743_s19, 4  ;;  %s139_s28 = sand.u32 1, %s723_s14  }
  0x2f   : > { %s1053_s8 = smov (%p33_p10, %s1051_s8), 0  ;;  %p877_p13 = por %p50_p12, %p49_p9 }
  0x30   : > { %s410_s30 = sshll.u32 %s1053_s8, 1  ;;  %s86_s3 = ssub.s32 %s739_s18, %s1053_s8 }
  0x31   : > { %s38_s4 = sadd.s32 %s410_s30, %s1049_s7  ;;  %p87_p2 = scmp.eq.s32.totalorder %s86_s3, 0 }
  0x32   : > { %s39_s5 = ssub.s32 %s36_s21, %s38_s4  ;;  %s414_s6 = sshll.u32 %s139_s28, 4 }
  0x33   : > { %p40_p4 = scmp.eq.s32.totalorder %s39_s5, 0  ;;  %s431_s17 = sshll.u32 %s36_s21, 8 }
  0x34   : > { %s888_s12 = scalar_select %p87_p2, %s711_s11, %s89_s23  }
  0x35   : > { %s891_s1 = scalar_select %p40_p4, %s723_s14, %s42_s20  }
  0x36   : > { %s143_s26 = scalar_lea.vmem [#allocation3], %s414_s6  ;;  %s151_s16 = scalar_lea.hbm %s1006_s0, %s431_s17 }
  0x37   : > { %s152_s9 = sshll.u32 %s143_s26, 4  ;;  %p900_p5 = pnand %p464_p0, %p877_p13  ;;  %s153_s9 = int_to_ptr.vmem [resolvable:$true] %s152_s9 }
  0x38   : > { %s140_s3 = scalar_lea.sflag [#allocation4], %s139_s28  ;;  %s604_s23 = scalar_lea.vmem %s153_s9, 256 }
  0x39   : > { %p593_p6 = pneg %p900_p5  ;;  %p605_p8 = scmp.ne.s32.totalorder %s153_s9, %s604_s23 }
  0x3a   : > { %s748_s26 = smov [#allocation3]  }
  0x3b   : > { %p607_p7 = pnand %p605_p8, %p593_p6  ;;  %s609_s20 = sshll.u32 %s748_s26, 4  ;;  %s610_s20 = int_to_ptr.vmem [resolvable:$false] %s609_s20 }
  0x3c   : > { %s611_s2 = scalar_lea.vmem %s610_s20, 512  ;;  %p612_p10 = scmp.lt.s32.totalorder %s153_s9, %s610_s20 }
  0x3d   : > { %p608_p9 = pneg %p607_p7  ;;  %p613_p12 = scmp.lt.s32.totalorder %s611_s2, %s604_s23 }
  0x3f   : > { %p614_p2 = por %p613_p12, %p612_p10 }
  0x41   : > { %p615_p4 = pnand %p614_p2, %p608_p9 }
  0x43   : > { %618 = shalt.err (!%p615_p4)
}
  0x44   : > { %s749_s17 = smov 32   ;;  %s750_s25 = smov 2  }
  0x45   : > { %458 = dma.hbm_to_vmem [thread:$0]  (!%p900_p5), %s151_s16, 256, %s153_s9, %s140_s3, %s749_s17, %s749_s17, %s750_s25  }
  0x46   : > { %164 = sbr.rel (%p851_p11) target bundleno = 344 (0x158), region = 28  ;;  %s166_s21 = sand.u32 (!%p851_p11), 1, %s719_s13  }
  0x47   : > { %s419_s28 = sshll.u32 (!%p851_p11), %s166_s21, 4  ;;  %s167_s29 = scalar_lea.sflag (!%p851_p11), [#allocation4], %s166_s21 }
  0x48   : > { %s911_s4 = scalar_lea.vmem (!%p851_p11), [#allocation3], %s419_s28 }
  0x4b   : > { %690 = dma.done.wait (%p835_p3), %s167_s29, 256  }
  0x4c   : > { %692 = vsyncadd (%p835_p3), %s167_s29, 4294967040 }
  0x4d   : > { %694 = dma.done.wait (%p826_p1), [#allocation7], 256  }
  0x4e   : > { %696 = vsyncadd (%p826_p1), [#allocation7], 4294967040  ;;  %s192_s9 = sand.u32 1, %s707_s10   ;;  %p422_p11 = scmp.ne.s32.totalorder %s727_s15, 0 }
  0x4f   : > { %s924_s16 = sshll.u32 %s192_s9, 1 }
  0x50   : > { %s194_s27 = scalar_lea.vmem [#allocation8], %s924_s16  ;;  %202 = sbr.rel (%p422_p11) target bundleno = 87 (0x57), region = 40 }
  0x55   : > { %vm203_vm0 = vcmask 254976   ;;  %v751_v0 = vmov 0.0  }
  0x56   : > { %204 = vst.msk [vmem:[#allocation2] sm:$0x3] %vm203_vm0, %v751_v0 }
  0x57 PF: > { %v206_v1 = vld [vmem:[%s911_s4] sm:$0x3]  ;;  %v207_v2 = vld [vmem:[%s911_s4 + $0x2] sm:$0x3]  ;;  %v208_v3 = vld [vmem:[%s911_s4 + $0x4] sm:$0x3] }
  0x58   : > { %v209_v4 = vld [vmem:[%s911_s4 + $0x6] sm:$0x3]  ;;  %vm214_vm1 = vcmask 254976   ;;  %v210_v8 = vld [vmem:[%s911_s4 + $0x8] sm:$0x3]  ;;  %p423_p1 = scmp.ne.s32.totalorder %s727_s15, 1 }
  0x59   : > { %v215_v5 = vsel %vm214_vm1, %v206_v1, 0.0  ;;  %v216_v6 = vsel %vm214_vm1, %v207_v2, 0.0  ;;  %v218_v7 = vsel %vm214_vm1, %v208_v3, 0.0  ;;  %v220_v10 = vsel %vm214_vm1, %v209_v4, 0.0  ;;  %v211_v11 = vld [vmem:[%s911_s4 + $0xa] sm:$0x3] }
  0x5a   : > { %v217_v9 = vadd.f32 %v216_v6, %v215_v5  ;;  %v222_v13 = vsel %vm214_vm1, %v210_v8, 0.0  ;;  %v212_v14 = vld [vmem:[%s911_s4 + $0xc] sm:$0x3]  ;;  %v224_v16 = vsel %vm214_vm1, %v211_v11, 0.0  ;;  %v213_v17 = vld [vmem:[%s911_s4 + $0xe] sm:$0x3] }
  0x5b   : > { %v226_v19 = vsel %vm214_vm1, %v212_v14, 0.0  ;;  %v228_v21 = vsel %vm214_vm1, %v213_v17, 0.0 }
  0x5c   : > { %v219_v12 = vadd.f32 %v218_v7, %v217_v9 }
  0x5d   : > { %v205_v23 = vld [vmem:[#allocation2] sm:$0x3] }
  0x5e   : > { %v221_v15 = vadd.f32 %v220_v10, %v219_v12 }
  0x60   : > { %v223_v18 = vadd.f32 %v222_v13, %v221_v15 }
  0x62   : > { %v225_v20 = vadd.f32 %v224_v16, %v223_v18 }
  0x64   : > { %v227_v22 = vadd.f32 %v226_v19, %v225_v20 }
  0x66   : > { %v229_v24 = vadd.f32 %v228_v21, %v227_v22  ;;  %235 = sbr.rel (%p423_p1) target bundleno = 317 (0x13d), region = 44 }
  0x68   : > { %v230_v25 = vadd.f32 %v229_v24, %v205_v23 }
  0x6a   : > { %231 = vst.msk [vmem:[#allocation2] sm:$0x3] %vm214_vm1, %v230_v25 }
  0x6b   : > { %v563_v26 = vld [vmem:[#allocation6 + $0x8] sm:$0xff]   ;;  %v752_v27 = vmov 0.0   ;;  %v564_v28 = vld [vmem:[#allocation6] sm:$0xff]   ;;  %vm753_vm2 = vmmov 0   ;;  %vm255_vm3 = vcmask 261120  }
  0x6c   : > { %435 = vmatprep.subr.bf16.mxu0 %v752_v27  ;;  %439 = vmatprep.mubr.msk.bf16.mxu0 %vm753_vm2, %v752_v27 }
  0x6d   : > { %436 = vmatpush3.bf16.msra.mxu0 %v563_v26 }
  0x6e   : > { %437 = vmatprep.subr.bf16.mxu0 %v752_v27 }
  0x71   : > { %v236_v29 = vld [vmem:[#allocation2] sm:$0x3]  ;;  %438 = vmatpush3.bf16.msra.mxu0 %v564_v28 }
  0x72   : > { %v237_v30 = vmul.f32 0.05, %v236_v29 }
  0x74   : > { %v238_v31 = vpack.c.bf16 %v237_v30, %v237_v30 }
  0x76   : > { %440 = vmatmul.mubr.msk.bf16.vlgmr.msra.gmra.mxu0 %vm255_vm3, %v238_v31 }
 0x136   : > { %v293_v32 = vpop.f32.mrf.mxu0 }
 0x137   : > { %299 = vst.msk [vmem:[%s194_s27] sm:$0x3] %vm214_vm1, %v293_v32 }
 0x138   : > { %v441_v33 = vpop.f32.mrf.mxu0 }
 0x13a   : > { %v296_v34 = vpop.f32.mrf.mxu0 }
 0x13c   : > { %v442_v35 = vpop.f32.mrf.mxu0 }
 0x13d PF: > { %s1031_s15 = sld [smem:[#allocation13_spill]]  ;;  %s314_s23 = sshll.u32 %s194_s27, 4  ;;  %s315_s23 = int_to_ptr.vmem [resolvable:$true] %s314_s23 }
 0x13e   : > { %s1032_s22 = sld [smem:[#allocation15_spill]]  ;;  %s301_s26 = scalar_lea.sflag [#allocation5], %s192_s9 }
 0x13f   : > { %s1033_s30 = sld [smem:[#allocation18_spill]]  ;;  %s619_s20 = scalar_lea.vmem %s315_s23, 32 }
 0x140   : > { %p620_p3 = scmp.ne.s32.totalorder %s315_s23, %s619_s20  ;;  %s754_s2 = smov [#allocation8]  }
 0x141   : > { %s623_s17 = sshll.u32 %s754_s2, 4  ;;  %s624_s17 = int_to_ptr.vmem [resolvable:$false] %s623_s17 }
 0x142   : > { %s625_s25 = scalar_lea.vmem %s624_s17, 64  ;;  %p626_p6 = scmp.lt.s32.totalorder %s315_s23, %s624_s17 }
 0x143   : > { %s428_s24 = sshll.u32 %s1031_s15, 5  ;;  %p627_p8 = scmp.lt.s32.totalorder %s625_s25, %s619_s20 }
 0x144   : > { %p1034_p0 = scmp.ne.s32.totalorder %s1032_s22, 0 }
 0x145   : > { %s312_s3 = scalar_lea.hbm %s1033_s30, %s428_s24  ;;  %p628_p7 = por %p627_p8, %p626_p6 }
 0x146   : > { %p621_p13 = pnand %p620_p3, %p1034_p0 }
 0x148   : > { %p622_p5 = pneg %p621_p13 }
 0x14a   : > { %p629_p9 = pnand %p628_p7, %p622_p5 }
 0x14c   : > { %632 = shalt.err (!%p629_p9)
}
 0x14d   : > { %s633_s21 = scalar_lea.hbm %s312_s3, 32  ;;  %s637_s4 = scalar_lea.hbm %s1033_s30, 64 }
 0x14e   : > { %p634_p10 = scmp.ne.s32.totalorder %s312_s3, %s633_s21  ;;  %p638_p4 = scmp.lt.s32.totalorder %s312_s3, %s1033_s30 }
 0x14f   : > { %p639_p11 = scmp.lt.s32.totalorder %s637_s4, %s633_s21 }
 0x150   : > { %p635_p12 = pnand %p634_p10, %p1034_p0 }
 0x151   : > { %p640_p1 = por %p639_p11, %p638_p4 }
 0x152   : > { %p636_p2 = pneg %p635_p12 }
 0x154   : > { %p641_p3 = pnand %p640_p1, %p636_p2 }
 0x156   : > { %644 = shalt.err (!%p641_p3)
}
 0x157   : > { %449 = dma.vmem_to_hbm [thread:$0]  (%p1034_p0), %s315_s23, 32, %s312_s3, %s301_s26  }
 0x158 PF: > { %s1035_s27 = sld [smem:[#allocation12_spill]]  ;;  %p466_p13 = scmp.ge.s32.totalorder %s743_s19, 2 }
 0x159   : > { %s1036_s15 = sld [smem:[#allocation16_spill]] }
 0x15e   : > { %s326_s24 = sand.u32 1, %s1035_s27  }
 0x15f   : > { %p1037_p5 = scmp.ne.s32.totalorder %s1036_s15, 0  ;;  %s327_s5 = scalar_lea.sflag [#allocation5], %s326_s24 }
 0x161   : > { %p460_p6 = pnand %p466_p13, %p1037_p5 }
 0x163   : > { %p461_p8 = pneg %p460_p6 }
 0x165   : > { %698 = dma.done.wait (%p461_p8), %s327_s5, 32  }
 0x166   : > { %700 = vsyncadd (%p461_p8), %s327_s5, 4294967264  ;;  %s19_s19 = sadd.s32 1, %s743_s19   ;;  %s1038_s15 = sld [smem:[#allocation14_spill]] }
 0x167   : > { %p16_p7 = scmp.ge.s32.totalorder %s19_s19, 6   ;;  %s1039_s9 = smov %s707_s10 }
 0x168   : > { %s1040_s10 = smov %s711_s11  ;;  %s1041_s11 = smov %s888_s12 }
 0x169   : > { %s1042_s12 = smov %s719_s13  ;;  %s1043_s13 = smov %s723_s14 }
 0x16a   : > { %s1044_s14 = smov %s891_s1  ;;  %s1045_s16 = smov %s739_s18 }
 0x16b   : > { %s1046_s17 = smov %s1049_s7  ;;  %s1047_s18 = smov %s1053_s8 }
 0x16c   :  { %18 = sbr.rel (!%p16_p7) target bundleno = 13 (0xd), region = 85 }
 0x171   :  { %332 = vsyncpa [#allocation4], 1 }
 0x172   :  { %334 = vsyncpa [#allocation4 + $0x1], 1 }
 0x173   :  { %335 = vsyncpa [#allocation7], 1 }
 0x174   :  { %336 = vsyncpa [#allocation5], 1 }
 0x175   :  { %338 = vsyncpa [#allocation5 + $0x1], 1 }

</bundles_post_ra>
